<compile_context>
chip_gen: v6e
topology: v6e:2x2x1
jax: 0.10.0
libtpu: 0.0.40
codegen_flags: <defaults>
</compile_context>

<pallas_src>
import jax
import jax.numpy as jnp
from jax.experimental import pallas as pl
from jax.experimental.pallas import tpu as pltpu


def _round_up(x, m):
    return ((x + m - 1) // m) * m


def _pick_tm(b_pad):
    """Largest batch tile (multiple of 8, <= 256) that divides the 8-rounded batch."""
    for cand in (256, 128, 64, 32, 16, 8):
        if b_pad % cand == 0:
            return cand
    return b_pad  # unreachable: b_pad is a multiple of 8


def _pick_tn(h_pad, m_tiles):
    """Hidden tile: prefer 256 (full MXU width) but keep >= 2 parallel blocks for v7x."""
    if h_pad % 256 == 0 and (h_pad // 256 >= 2 or m_tiles >= 2):
        return 256
    if h_pad >= 256:
        return 128
    return h_pad  # h_pad == 128


# --------------------------------------------------------------------------- #
# Kernels
# --------------------------------------------------------------------------- #

def _hifi_step_kernel(x_ref, w_ref, db_ref, u_ref, o_ref):
    """Single forward step.  Grid = (M tiles, N tiles); full K per block.

    x_ref : (tm, K_pad)   mxu dtype
    w_ref : (K_pad, tn)   mxu dtype (per-neuron gain C already folded in)
    db_ref: (2, tn)  f32  row 0 = decay = 1 - tau, row 1 = bias = tau * U_rest
    u_ref : (tm, tn) or (1, tn) f32 previous membrane potential
    o_ref : (tm, tn) f32  new membrane potential
    """
    acc = jnp.dot(x_ref[...], w_ref[...], preferred_element_type=jnp.float32)
    decay = db_ref[0:1, :]
    bias = db_ref[1:2, :]
    u_new = u_ref[...] * decay + acc + bias
    o_ref[...] = jnp.where(u_new > 0.0, u_new, 0.1 * u_new).astype(o_ref.dtype)


def _hifi_seq_kernel(x_ref, w_ref, db_ref, u0_ref, o_ref):
    """Fused T-step recurrence.  Weight block stays resident across all steps.

    x_ref : (T, tm, K_pad) mxu dtype
    w_ref : (K_pad, tn)    mxu dtype
    db_ref: (2, tn)        f32
    u0_ref: (1, tn) or (tm, tn) f32 initial membrane state
    o_ref : (T, tm, tn)    f32 per-step membrane potentials
    """
    T, tm, _ = x_ref.shape
    tn = w_ref.shape[1]
    decay = db_ref[0:1, :]
    bias = db_ref[1:2, :]
    u = jnp.broadcast_to(u0_ref[...], (tm, tn))
    for t in range(T):  # static unroll; T is a compile-time block dim
        acc = jnp.dot(x_ref[t], w_ref[...], preferred_element_type=jnp.float32)
        u = u * decay + acc + bias
        u = jnp.where(u > 0.0, u, 0.1 * u)
        o_ref[t] = u


# --------------------------------------------------------------------------- #
# Parameter preparation (once per model, NOT per timestep)
# --------------------------------------------------------------------------- #

def fold_and_pad_params(weight, tau, C, U_rest, *, mxu_dtype=jnp.bfloat16):
    """Fold C into the weight columns, precompute decay/bias, pad to 128 multiples.

    bf16 MXU operands are the default on all generations (v5e/v6e/v7x all have
    bf16-native MXUs); membrane math stays f32 inside the kernel.  Note that the
    wrapper casts x to the same dtype, so both matmul operands are quantized.
    """
    K, H = weight.shape
    K_pad = _round_up(K, 128)
    H_pad = _round_up(H, 128)

    w_eff = weight.astype(jnp.float32) * C.astype(jnp.float32)[None, :]
    w_p = jnp.zeros((K_pad, H_pad), mxu_dtype).at[:K, :H].set(w_eff.astype(mxu_dtype))

    db = jnp.zeros((2, H_pad), jnp.float32)
    db = db.at[0, :H].set(1.0 - tau.astype(jnp.float32))
    db = db.at[1, :H].set(tau.astype(jnp.float32) * U_rest.astype(jnp.float32))

    return dict(w=w_p, db=db, K=K, H=H, K_pad=K_pad, H_pad=H_pad,
                mxu_dtype=mxu_dtype)


# --------------------------------------------------------------------------- #
# Padded-layout entry points (no per-call pad/slice on this path)
# --------------------------------------------------------------------------- #

def _compiler_params(est_vmem_bytes):
    kwargs = dict(dimension_semantics=("parallel", "parallel"))
    if est_vmem_bytes > 12 * 1024 * 1024:   # keep under v5e's 16 MiB scoped default
        kwargs["vmem_limit_bytes"] = int(est_vmem_bytes * 2)
    return pltpu.CompilerParams(**kwargs)


def output_hifi_forward_padded(params, x_p, u_p, *, alias_state=True):
    """Single forward step on padded arrays.

    x_p: [B_pad, K_pad] in params['mxu_dtype']
    u_p: [B_pad, H_pad] f32 (recurrent state; aliased in place) or [1, H_pad] f32
    returns new U: [B_pad, H_pad] f32
    """
    B_pad, K_pad = x_p.shape
    H_pad = params["H_pad"]
    assert K_pad == params["K_pad"]

    tm = _pick_tm(B_pad)
    m_tiles = B_pad // tm
    tn = _pick_tn(H_pad, m_tiles)
    n_tiles = H_pad // tn

    broadcast_state = (u_p.shape[0] == 1)
    if broadcast_state:
        u_spec = pl.BlockSpec((1, tn), lambda i, j: (0, j))
    else:
        u_spec = pl.BlockSpec((tm, tn), lambda i, j: (i, j))

    b_mxu = jnp.dtype(params["mxu_dtype"]).itemsize
    est = 2 * (tm * K_pad * b_mxu + K_pad * tn * b_mxu + 2 * tn * 4
               + (1 if broadcast_state else tm) * tn * 4 + tm * tn * 4)

    io_aliases = {} if (broadcast_state or not alias_state) else {3: 0}

    return pl.pallas_call(
        _hifi_step_kernel,
        out_shape=jax.ShapeDtypeStruct((B_pad, H_pad), jnp.float32),
        grid_spec=pltpu.PrefetchScalarGridSpec(
            num_scalar_prefetch=0,
            grid=(m_tiles, n_tiles),
            in_specs=[
                pl.BlockSpec((tm, K_pad), lambda i, j: (i, 0)),   # x tile (full K)
                pl.BlockSpec((K_pad, tn), lambda i, j: (0, j)),   # weight (C folded)
                pl.BlockSpec((2, tn), lambda i, j: (0, j)),       # [decay; bias]
                u_spec,                                           # previous U
            ],
            out_specs=pl.BlockSpec((tm, tn), lambda i, j: (i, j)),
        ),
        input_output_aliases=io_aliases,
        compiler_params=_compiler_params(est),
    )(x_p, params["w"], params["db"], u_p)


def output_hifi_sequence_padded(params, xs_p, u0_p):
    """Fused T-step recurrence on padded arrays.

    xs_p: [T, B_pad, K_pad] in params['mxu_dtype']
    u0_p: [1, H_pad] or [B_pad, H_pad] f32 initial membrane state
    returns per-step U: [T, B_pad, H_pad] f32
    """
    T, B_pad, K_pad = xs_p.shape
    H_pad = params["H_pad"]
    assert K_pad == params["K_pad"]

    tm = _pick_tm(B_pad)
    m_tiles = B_pad // tm
    tn = _pick_tn(H_pad, m_tiles)
    n_tiles = H_pad // tn

    broadcast_state = (u0_p.shape[0] == 1)
    u_spec = (pl.BlockSpec((1, tn), lambda i, j: (0, j)) if broadcast_state
              else pl.BlockSpec((tm, tn), lambda i, j: (i, j)))

    b_mxu = jnp.dtype(params["mxu_dtype"]).itemsize
    est = 2 * (T * tm * K_pad * b_mxu + K_pad * tn * b_mxu + 2 * tn * 4
               + (1 if broadcast_state else tm) * tn * 4 + T * tm * tn * 4)

    return pl.pallas_call(
        _hifi_seq_kernel,
        out_shape=jax.ShapeDtypeStruct((T, B_pad, H_pad), jnp.float32),
        grid_spec=pltpu.PrefetchScalarGridSpec(
            num_scalar_prefetch=0,
            grid=(m_tiles, n_tiles),
            in_specs=[
                pl.BlockSpec((T, tm, K_pad), lambda i, j: (0, i, 0)),  # all steps of x
                pl.BlockSpec((K_pad, tn), lambda i, j: (0, j)),        # weight, resident
                pl.BlockSpec((2, tn), lambda i, j: (0, j)),            # [decay; bias]
                u_spec,                                                # initial U
            ],
            out_specs=pl.BlockSpec((T, tm, tn), lambda i, j: (0, i, j)),
        ),
        compiler_params=_compiler_params(est),
    )(xs_p, params["w"], params["db"], u0_p)


# --------------------------------------------------------------------------- #
# Convenience wrappers (pad once / slice once; for demo & verification)
# --------------------------------------------------------------------------- #

def output_hifi_forward(params, x, U):
    """Single forward step. x: [B, K] f32; U: [H] or [B, H]. Returns [B, H] f32."""
    B, K = x.shape
    assert K == params["K"]
    H, K_pad, H_pad = params["H"], params["K_pad"], params["H_pad"]
    dt = params["mxu_dtype"]
    B_pad = _round_up(B, 8)

    x_p = jnp.zeros((B_pad, K_pad), dt).at[:B, :K].set(x.astype(dt))
    if U.ndim == 1:
        u_p = jnp.zeros((1, H_pad), jnp.float32).at[0, :H].set(U.astype(jnp.float32))
    else:
        u_p = jnp.zeros((B_pad, H_pad), jnp.float32).at[:B, :H].set(
            U.astype(jnp.float32))

    out = output_hifi_forward_padded(params, x_p, u_p)
    return out[:B, :H]


def output_hifi_sequence(params, xs, U0):
    """T consecutive forward steps. xs: [T, B, K]; U0: [H] or [B, H]."""
    T, B, K = xs.shape
    assert K == params["K"]
    H, K_pad, H_pad = params["H"], params["K_pad"], params["H_pad"]
    dt = params["mxu_dtype"]
    B_pad = _round_up(B, 8)

    xs_p = jnp.zeros((T, B_pad, K_pad), dt).at[:, :B, :K].set(xs.astype(dt))
    if U0.ndim == 1:
        u0_p = jnp.zeros((1, H_pad), jnp.float32).at[0, :H].set(U0.astype(jnp.float32))
    else:
        u0_p = jnp.zeros((B_pad, H_pad), jnp.float32).at[:B, :H].set(
            U0.astype(jnp.float32))

    out = output_hifi_sequence_padded(params, xs_p, u0_p)
    return out[:, :B, :H]


# --------------------------------------------------------------------------- #
# Reference (pure JAX, exact PyTorch semantics) & parameter construction
# --------------------------------------------------------------------------- #

def make_params(input_size, hidden_size, key):
    # kaiming_normal_(mode='fan_out', nonlinearity='relu') on an [in, out] tensor:
    # PyTorch fan_out = size(0) = input_size, gain = sqrt(2).
    std = jnp.sqrt(2.0 / input_size)
    weight = std * jax.random.normal(key, (input_size, hidden_size), dtype=jnp.float32)
    tau = jnp.full((hidden_size,), 0.2, dtype=jnp.float32)
    C = jnp.full((hidden_size,), 0.9, dtype=jnp.float32)
    U_rest = jnp.full((hidden_size,), 0.0, dtype=jnp.float32)
    # gamma / U_th exist in the module but are unused by Output_HIFICell.forward.
    return weight, tau, C, U_rest


def output_hifi_reference(x, weight, U, tau, C, U_rest):
    I = jnp.dot(x, weight)
    U2 = U[None, :] if U.ndim == 1 else U
    Un = U2 * (1.0 - tau) + I * C + tau * U_rest
    return jnp.where(Un > 0.0, Un, 0.1 * Un)


def output_hifi_sequence_reference(xs, weight, U0, tau, C, U_rest):
    outs = []
    U = U0
    for t in range(xs.shape[0]):
        U = output_hifi_reference(xs[t], weight, U, tau, C, U_rest)
        outs.append(U)
    return jnp.stack(outs)


# --------------------------------------------------------------------------- #
# Demo / correctness checks
# --------------------------------------------------------------------------- #

if __name__ == "__main__":
    key = jax.random.PRNGKey(0)
    k1, k2, k3, k4, k5 = jax.random.split(key, 5)

    # 1) Small single-step, f32 MXU operands, 1-D initial state (broadcast path).
    B, IN, HID = 2, 16, 32
    weight, tau, C, U_rest = make_params(IN, HID, k1)
    params_f32 = fold_and_pad_params(weight, tau, C, U_rest, mxu_dtype=jnp.float32)
    x = jax.random.normal(k2, (B, IN), dtype=jnp.float32)
    U0 = U_rest  # initial membrane state U = deepcopy(U_rest) -> shape [hidden]

    out = jax.block_until_ready(output_hifi_forward(params_f32, x, U0))
    ref = output_hifi_reference(x, weight, U0, tau, C, U_rest)
    assert out.shape == (B, HID)
    assert jnp.allclose(out, ref, atol=1e-4, rtol=1e-4), \
        float(jnp.max(jnp.abs(out - ref)))

    # 2) Multi-tile single-step (N tiled, padded dims now exact 128 multiples),
    #    f32, full [B, H] recurrent state aliased in place.
    B2, IN2, HID2 = 16, 640, 384
    weight2, tau2, C2, U_rest2 = make_params(IN2, HID2, k3)
    params2_f32 = fold_and_pad_params(weight2, tau2, C2, U_rest2,
                                      mxu_dtype=jnp.float32)
    x2 = jax.random.normal(k4, (B2, IN2), dtype=jnp.float32)
    U_prev = output_hifi_reference(x2, weight2, U_rest2, tau2, C2, U_rest2)  # [B2,H2]

    out2 = jax.block_until_ready(output_hifi_forward(params2_f32, x2, U_prev))
    ref2 = output_hifi_reference(x2, weight2, U_prev, tau2, C2, U_rest2)
    assert out2.shape == (B2, HID2)
    # Tolerance covers the default-precision f32 matmul path on the MXU vs XLA's dot.
    assert jnp.allclose(out2, ref2, atol=1e-3, rtol=1e-3), \
        float(jnp.max(jnp.abs(out2 - ref2)))

    # 3) Same shapes with the DEFAULT bf16 MXU operands (halved weight HBM stream).
    params2_bf16 = fold_and_pad_params(weight2, tau2, C2, U_rest2)
    out2b = jax.block_until_ready(output_hifi_forward(params2_bf16, x2, U_prev))
    assert jnp.allclose(out2b, ref2, atol=1e-1, rtol=5e-2), \
        float(jnp.max(jnp.abs(out2b - ref2)))

    # 4) Fused T-step sequence kernel: weight streamed from HBM once, U carried
    #    in registers across steps.  Equivalent to T consecutive forward() calls.
    T = 8
    params_bf16 = fold_and_pad_params(weight, tau, C, U_rest)
    xs = jax.random.normal(k5, (T, B, IN), dtype=jnp.float32)
    outs = jax.block_until_ready(output_hifi_sequence(params_bf16, xs, U_rest))
    refs = output_hifi_sequence_reference(xs, weight, U_rest, tau, C, U_rest)
    assert outs.shape == (T, B, HID)
    assert jnp.allclose(outs, refs, atol=1e-1, rtol=5e-2), \
        float(jnp.max(jnp.abs(outs - refs)))

    print("KERNEL_OK")
</pallas_src>

<mosaic_0001>
module attributes {stable_mosaic.version = 11 : i64} {
  func.func @_hifi_step_kernel(%arg0: i32, %arg1: i32, %arg2: memref<8x128xf32, #tpu.memory_space<vmem>>, %arg3: memref<128x128xf32, #tpu.memory_space<vmem>>, %arg4: memref<2x128xf32, #tpu.memory_space<vmem>>, %arg5: memref<1x128xf32, #tpu.memory_space<vmem>>, %arg6: memref<8x128xf32, #tpu.memory_space<vmem>>) attributes {dimension_semantics = [#tpu.dimension_semantics<parallel>, #tpu.dimension_semantics<parallel>], iteration_bounds = array<i64: 1, 1>, scalar_prefetch = 0 : i64, scratch_operands = 0 : i64, tpu.core_type = #tpu.core_type<tc>, window_params = [{transform_indices = @transform_0, window_bounds = array<i64: 8, 128>}, {transform_indices = @transform_1, window_bounds = array<i64: 128, 128>}, {transform_indices = @transform_2, window_bounds = array<i64: 2, 128>}, {transform_indices = @transform_3, window_bounds = array<i64: 1, 128>}, {transform_indices = @transform_4, window_bounds = array<i64: 8, 128>}]} {
    %c0 = arith.constant 0 : index
    %c0_0 = arith.constant 0 : index
    %0 = vector.load %arg2[%c0, %c0_0] : memref<8x128xf32, #tpu.memory_space<vmem>>, vector<8x128xf32>
    %c0_1 = arith.constant 0 : index
    %c0_2 = arith.constant 0 : index
    %1 = vector.load %arg3[%c0_1, %c0_2] : memref<128x128xf32, #tpu.memory_space<vmem>>, vector<128x128xf32>
    %cst = arith.constant dense<0.000000e+00> : vector<8x128xf32>
    %2 = tpu.matmul %0, %1, %cst {dimension_numbers = #tpu.dot_dimension_numbers<[1], [0], [0], [1], [0, 0, 1, 1], [], []>} : vector<8x128xf32>, vector<128x128xf32>, vector<8x128xf32> -> vector<8x128xf32>
    %c0_3 = arith.constant 0 : index
    %c0_4 = arith.constant 0 : index
    %3 = vector.load %arg4[%c0_3, %c0_4] : memref<2x128xf32, #tpu.memory_space<vmem>>, vector<1x128xf32>
    %c1 = arith.constant 1 : index
    %c0_5 = arith.constant 0 : index
    %4 = vector.load %arg4[%c1, %c0_5] : memref<2x128xf32, #tpu.memory_space<vmem>>, vector<1x128xf32>
    %c0_6 = arith.constant 0 : index
    %c0_7 = arith.constant 0 : index
    %5 = vector.load %arg5[%c0_6, %c0_7] : memref<1x128xf32, #tpu.memory_space<vmem>>, vector<1x128xf32>
    %6 = arith.mulf %5, %3 : vector<1x128xf32>
    %7 = vector.broadcast %6 : vector<1x128xf32> to vector<8x128xf32>
    %8 = arith.addf %7, %2 : vector<8x128xf32>
    %9 = vector.broadcast %4 : vector<1x128xf32> to vector<8x128xf32>
    %10 = arith.addf %8, %9 : vector<8x128xf32>
    %cst_8 = arith.constant 0.000000e+00 : f32
    %11 = vector.broadcast %cst_8 : f32 to vector<8x128xf32>
    %12 = arith.cmpf ogt, %10, %11 : vector<8x128xf32>
    %cst_9 = arith.constant 1.000000e-01 : f32
    %13 = vector.broadcast %cst_9 : f32 to vector<8x128xf32>
    %14 = arith.mulf %13, %10 : vector<8x128xf32>
    %15 = arith.select %12, %10, %14 : vector<8x128xi1>, vector<8x128xf32>
    %c0_10 = arith.constant 0 : index
    %c0_11 = arith.constant 0 : index
    %16 = vector.load %arg6[%c0_10, %c0_11] : memref<8x128xf32, #tpu.memory_space<vmem>>, vector<8x128xf32>
    tpu.vector_store %arg6[%c0_10, %c0_11], %15 {strides = array<i32>} : memref<8x128xf32, #tpu.memory_space<vmem>>, vector<8x128xf32>,
    return
  }
  func.func @transform_0(%arg0: i32, %arg1: i32) -> (i32, i32) {
    %c0_i32 = arith.constant 0 : i32
    %c0_i32_0 = arith.constant 0 : i32
    return %arg0, %c0_i32 : i32, i32
  }
  func.func @transform_1(%arg0: i32, %arg1: i32) -> (i32, i32) {
    %c0_i32 = arith.constant 0 : i32
    %c0_i32_0 = arith.constant 0 : i32
    return %c0_i32, %arg1 : i32, i32
  }
  func.func @transform_2(%arg0: i32, %arg1: i32) -> (i32, i32) {
    %c0_i32 = arith.constant 0 : i32
    %c0_i32_0 = arith.constant 0 : i32
    return %c0_i32, %arg1 : i32, i32
  }
  func.func @transform_3(%arg0: i32, %arg1: i32) -> (i32, i32) {
    %c0_i32 = arith.constant 0 : i32
    %c0_i32_0 = arith.constant 0 : i32
    return %c0_i32, %arg1 : i32, i32
  }
  func.func @transform_4(%arg0: i32, %arg1: i32) -> (i32, i32) {
    %c0_i32 = arith.constant 0 : i32
    return %arg0, %arg1 : i32, i32
  }
}

</mosaic_0001>

<bundles_post_ra>
// kernel: tpu_custom_call.1
= control target key start
LH: loop header
LB: loop body
LE: loop exit
PB: predicated region body
PF: predicated region fallthrough
CT: control target
= control target key end

     0   :  { %9 = vsyncpa [#allocation3], 0  ;;  %s343_s0 = inlined_call_operand.hbm [shape: f32[8,128], index: 0, kind: input, shape index: {}]   ;;  %s344_s1 = inlined_call_operand.hbm [shape: f32[128,128], index: 1, kind: input, shape index: {}]   ;;  %s345_s2 = inlined_call_operand.vmem [shape: f32[2,128], index: 2, kind: input, shape index: {}]   ;;  %s346_s3 = inlined_call_operand.vmem [shape: f32[1,128], index: 3, kind: input, shape index: {}]   ;;  %s347_s4 = inlined_call_operand.hbm [shape: f32[8,128], index: 4, kind: output, shape index: {}]  }
   0x1   :  { %10 = vsyncpa [#allocation6], 0 }
   0x2   :  { %11 = vsyncpa [#allocation4], 0  ;;  %s293_s15 = smov [#allocation2]   ;;  %s294_s17 = smov [#allocation5]  }
   0x3   :  { %s18_s16 = sshll.u32 %s293_s15, 4  ;;  %s27_s18 = sshll.u32 %s294_s17, 4  ;;  %s19_s16 = int_to_ptr.vmem [resolvable:$true] %s18_s16  ;;  %s28_s18 = int_to_ptr.vmem [resolvable:$true] %s27_s18 }
   0x4   :  { %s235_s19 = scalar_lea.vmem %s19_s16, 128  ;;  %p240_p1 = scmp.lt.s32.totalorder %s19_s16, %s19_s16 }
   0x5   :  { %p236_p0 = scmp.ne.s32.totalorder %s19_s16, %s235_s19  ;;  %p241_p2 = scmp.lt.s32.totalorder %s235_s19, %s235_s19 }
   0x7   :  { %p242_p3 = por %p241_p2, %p240_p1 }
   0x9   :  { %p243_p4 = pnand %p242_p3, %p236_p0 }
   0xb   :  { %246 = shalt.err (!%p243_p4)
}
   0xc   :  { %21 = dma.hbm_to_vmem [thread:$0]  %s343_s0, 128, %s19_s16, [#allocation3]  }
   0xd   :  { %s255_s22 = scalar_lea.vmem %s28_s18, 2048  ;;  %p260_p6 = scmp.lt.s32.totalorder %s28_s18, %s28_s18 }
   0xe   :  { %p256_p5 = scmp.ne.s32.totalorder %s28_s18, %s255_s22  ;;  %p261_p7 = scmp.lt.s32.totalorder %s255_s22, %s255_s22 }
  0x10   :  { %p262_p8 = por %p261_p7, %p260_p6 }
  0x12   :  { %p263_p9 = pnand %p262_p8, %p256_p5 }
  0x14   :  { %266 = shalt.err (!%p263_p9)
}
  0x15   :  { %s295_s23 = smov 128   ;;  %s296_s24 = smov 8  }
  0x16   :  { %33 = dma.hbm_to_vmem [thread:$0]  %s344_s1, 2048, %s28_s18, [#allocation6], %s295_s23, %s295_s23, %s296_s24  }
  0x17   :  { %287 = dma.done.wait [#allocation3], 128  }
  0x18   :  { %288 = vsyncadd [#allocation3], 4294967168 }
  0x19   :  { %289 = dma.done.wait [#allocation6], 2048  }
  0x1a   :  { %290 = vsyncadd [#allocation6], 4294965248  ;;  %v297_v0 = vmov 0.0   ;;  %vm298_vm0 = vmmov 0   ;;  %v60_v1 = vld [vmem:[#allocation5 + $0x78] sm:$0xff]  ;;  %v59_v2 = vld [vmem:[#allocation5 + $0x70] sm:$0xff]  ;;  %v136_v18 = vlaneseq }
  0x1b   :  { %185 = vmatprep.subr.mxu0 %v297_v0  ;;  %217 = vmatprep.mubr.msk.f32.mxu0 %vm298_vm0, %v297_v0  ;;  %v58_v3 = vld [vmem:[#allocation5 + $0x68] sm:$0xff]  ;;  %v57_v4 = vld [vmem:[#allocation5 + $0x60] sm:$0xff]  ;;  %v56_v5 = vld [vmem:[#allocation5 + $0x58] sm:$0xff]  ;;  %s299_s5 = smov [#allocation7]  }
  0x1c   :  { %186 = vmatpush3.msra.mxu0 %v60_v1  ;;  %v55_v6 = vld [vmem:[#allocation5 + $0x50] sm:$0xff]  ;;  %v54_v7 = vld [vmem:[#allocation5 + $0x48] sm:$0xff]  ;;  %v53_v8 = vld [vmem:[#allocation5 + $0x40] sm:$0xff]  ;;  %v137_v19 = vshrl.u32 %v136_v18, 7  ;;  %s157_s6 = sshll.u32 %s299_s5, 4  ;;  %s158_s6 = int_to_ptr.vmem [resolvable:$true] %s157_s6 }
  0x1d   :  { %187 = vmatprep.subr.mxu0 %v297_v0  ;;  %v52_v9 = vld [vmem:[#allocation5 + $0x38] sm:$0xff]  ;;  %v51_v10 = vld [vmem:[#allocation5 + $0x30] sm:$0xff]  ;;  %v50_v11 = vld [vmem:[#allocation5 + $0x28] sm:$0xff]  ;;  %s267_s7 = scalar_lea.vmem %s158_s6, 128  ;;  %p272_p11 = scmp.lt.s32.totalorder %s158_s6, %s158_s6 }
  0x1e   :  { %188 = vmatpush3.msra.mxu0 %v59_v2  ;;  %v49_v12 = vld [vmem:[#allocation5 + $0x20] sm:$0xff]  ;;  %v48_v13 = vld [vmem:[#allocation5 + $0x18] sm:$0xff]  ;;  %v47_v14 = vld [vmem:[#allocation5 + $0x10] sm:$0xff]  ;;  %v138_v23 = vsub.s32 0, %v137_v19  ;;  %p268_p10 = scmp.ne.s32.totalorder %s158_s6, %s267_s7  ;;  %p273_p12 = scmp.lt.s32.totalorder %s267_s7, %s267_s7 }
  0x1f   :  { %189 = vmatprep.subr.mxu0 %v297_v0  ;;  %v46_v15 = vld [vmem:[#allocation5 + $0x8] sm:$0xff]  ;;  %v45_v16 = vld [vmem:[#allocation5] sm:$0xff]  ;;  %v44_v17 = vld [vmem:[#allocation2] sm:$0xff] }
  0x20   :  { %190 = vmatpush3.msra.mxu0 %v58_v3  ;;  %v131_v20 = vld [vmem:[%s345_s2] sm:$0x1]  ;;  %v167_v26 = vld [vmem:[%s345_s2 + $0x1] ss:$0 sm:$0xff]  ;;  %p274_p13 = por %p273_p12, %p272_p11 }
  0x21   :  { %191 = vmatprep.subr.mxu0 %v297_v0  ;;  %v133_v21 = vld [vmem:[%s346_s3] sm:$0x1] }
  0x22   :  { %192 = vmatpush3.msra.mxu0 %v57_v4  ;;  %v134_v22 = vmul.f32 %v133_v21, %v131_v20  ;;  %p275_p0 = pnand %p274_p13, %p268_p10 }
  0x23   :  { %193 = vmatprep.subr.mxu0 %v297_v0 }
  0x24   :  { %194 = vmatpush3.msra.mxu0 %v56_v5  ;;  %v139_v24 = vrot.slane %v134_v22, %v138_v23 }
  0x25   :  { %195 = vmatprep.subr.mxu0 %v297_v0 }
  0x26   :  { %196 = vmatpush3.msra.mxu0 %v55_v6 }
  0x27   :  { %197 = vmatprep.subr.mxu0 %v297_v0 }
  0x28   :  { %198 = vmatpush3.msra.mxu0 %v54_v7 }
  0x29   :  { %199 = vmatprep.subr.mxu0 %v297_v0 }
  0x2a   :  { %200 = vmatpush3.msra.mxu0 %v53_v8 }
  0x2b   :  { %201 = vmatprep.subr.mxu0 %v297_v0 }
  0x2c   :  { %202 = vmatpush3.msra.mxu0 %v52_v9 }
  0x2d   :  { %203 = vmatprep.subr.mxu0 %v297_v0 }
  0x2e   :  { %204 = vmatpush3.msra.mxu0 %v51_v10 }
  0x2f   :  { %205 = vmatprep.subr.mxu0 %v297_v0 }
  0x30   :  { %206 = vmatpush3.msra.mxu0 %v50_v11 }
  0x31   :  { %207 = vmatprep.subr.mxu0 %v297_v0 }
  0x32   :  { %208 = vmatpush3.msra.mxu0 %v49_v12 }
  0x33   :  { %209 = vmatprep.subr.mxu0 %v297_v0 }
  0x34   :  { %210 = vmatpush3.msra.mxu0 %v48_v13 }
  0x35   :  { %211 = vmatprep.subr.mxu0 %v297_v0 }
  0x36   :  { %212 = vmatpush3.msra.mxu0 %v47_v14 }
  0x37   :  { %213 = vmatprep.subr.mxu0 %v297_v0 }
  0x38   :  { %214 = vmatpush3.msra.mxu0 %v46_v15 }
  0x39   :  { %215 = vmatprep.subr.mxu0 %v297_v0 }
  0x3a   :  { %216 = vmatpush3.msra.mxu0 %v45_v16 }
  0x3b   :  { %218 = vmatmul.mubr.f32.vlgmr.msra.gmra.mxu0 %v44_v17 }
  0xfb   :  { %v127_v25 = vpop.f32.mrf.mxu0 }
  0xfc   :  { %v141_v27 = vadd.f32 %v139_v24, %v127_v25 }
  0xfd   :  { %v219_v28 = vpop.f32.mrf.mxu0 }
  0xfe   :  { %v146_v29 = vadd.f32 %v167_v26, %v141_v27 }
 0x100   :  { %v148_v30 = vmul.f32 0.1, %v146_v29  ;;  %vm147_vm1 = vcmp.gt.f32.partialorder %v146_v29, 0.0 }
 0x102   :  { %v149_v31 = vsel %vm147_vm1, %v146_v29, %v148_v30 }
 0x103   :  { %150 = vst [vmem:[#allocation7] sm:$0xff] %v149_v31 }
 0x104   :  { %278 = shalt.err (!%p275_p0)
}
 0x105   :  { %160 = dma.vmem_to_hbm [thread:$0]  %s158_s6, 128, %s347_s4, [#allocation4]  }
 0x106   :  { %291 = dma.done.wait [#allocation4], 128  }
 0x107   :  { %292 = vsyncadd [#allocation4], 4294967168 }
 0x108   :  { %164 = vsyncpa [#allocation3], 1 }
 0x109   :  { %165 = vsyncpa [#allocation6], 1 }
 0x10a   :  { %166 = vsyncpa [#allocation4], 1 }

</bundles_post_ra>
